<compile_context>
chip_gen: v7x
topology: tpu7x:2x2x1
jax: 0.10.0
libtpu: 0.0.40
codegen_flags: <defaults>
</compile_context>

<pallas_src>
import jax
import jax.numpy as jnp
from jax import lax
from jax.experimental import pallas as pl
from jax.experimental.pallas import tpu as pltpu


def _relu6(v):
    return jnp.minimum(jnp.maximum(v, 0.0), 6.0)


# ----------------------------- kernel ---------------------------------------


def make_kernel(H, W, Nb, Cin, Chid, Cout, use_res, compute_dtype):
    HW = H * W
    L = Nb * HW
    cd = compute_dtype

    def kernel(rowcol_ref, x_ref, w1_ref, w3_ref, p_ref, o_ref):
        # ---- hoisted per-image border masks (computed once per grid step) ----
        row = rowcol_ref[0:1, :]                      # (1, L) int32, row within image
        col = rowcol_ref[1:2, :]                      # (1, L) int32, col within image
        m_left = col >= 1                             # dw = -1 source is valid
        m_right = col <= W - 2                        # dw = +1 source is valid
        m_up = row >= 1                               # dh = -1 source is valid
        m_down = row <= H - 2                         # dh = +1 source is valid

        x = x_ref[...]                                # (Cin, L) compute dtype

        # ---- 1x1 expand conv (BN scale folded into w1) + bias + ReLU6 --------
        h1 = jnp.dot(w1_ref[...], x, preferred_element_type=jnp.float32)
        b1 = p_ref[0:Chid, 0:1]                       # (Chid, 1) f32
        h1 = _relu6(h1 + b1).astype(cd)               # (Chid, L)

        # ---- 3x3 depthwise conv, stride 1, pad 1 (shift-separable) -----------
        # out[c,p] = sum_{dh,dw} k[c,dh,dw] * h1[c, p + dh*W + dw] with zero pad.
        # Step 1: column-shifted, column-masked copies (2 rolls + 2 selects).
        # Step 2: three per-dh weighted row sums (9 muls, 6 adds).
        # Step 3: roll the dh=+/-1 sums by +/-W, row-mask, accumulate (2 rolls,
        #         2 selects, 2 adds).  Column masks commute with +/-W shifts
        #         because col(p + dh*W mod L) == col(p).
        zero = jnp.zeros_like(h1)
        t_m1 = jnp.where(m_left, pltpu.roll(h1, shift=1, axis=1), zero)      # h1[p-1]
        t_p1 = jnp.where(m_right, pltpu.roll(h1, shift=L - 1, axis=1), zero)  # h1[p+1]

        def tap(dh, dw):
            idx = 1 + (dh + 1) * 3 + (dw + 1)          # torch kh*3+kw layout
            return p_ref[0:Chid, idx:idx + 1].astype(cd)

        def row_sum(dh):
            return tap(dh, -1) * t_m1 + tap(dh, 0) * h1 + tap(dh, 1) * t_p1

        s_m1, s_0, s_p1 = row_sum(-1), row_sum(0), row_sum(1)
        acc = s_0
        acc = acc + jnp.where(m_up, pltpu.roll(s_m1, shift=W, axis=1), zero)
        acc = acc + jnp.where(m_down, pltpu.roll(s_p1, shift=L - W, axis=1), zero)

        b2 = p_ref[0:Chid, 10:11]
        h2 = _relu6(acc.astype(jnp.float32) + b2).astype(cd)                  # (Chid, L)

        # ---- 1x1 project conv (BN folded) + bias (+ residual) ---------------
        h3 = jnp.dot(w3_ref[...], h2, preferred_element_type=jnp.float32)
        h3 = h3 + p_ref[0:Cout, 11:12]
        if use_res:
            h3 = h3 + x.astype(jnp.float32)
        o_ref[...] = h3.astype(o_ref.dtype)

    return kernel


# ----------------------------- host wrapper ----------------------------------


def _choose_batch_block(N):
    """Pack several images into the lane axis per grid step, but keep >= 2 grid
    steps when possible (v7x shards the 'parallel' axis across 2 TensorCores)."""
    if N < 4:
        return 1
    nb = min(8, N // 2)
    while N % nb:
        nb -= 1
    return max(nb, 1)


def inverted_residual_pallas(x_nchw, kernel_params, *, stride=1,
                             batch_block=None, compute_dtype=jnp.float32):
    """x_nchw: (N, Cin, H, W).  kernel_params = (w1f, w3f, packed).

    compute_dtype=bfloat16 is the v6e/v7x fast path (f32 MXU accumulation, f32
    bias/ReLU6/residual).  Keep float32 on v5e (no bf16 VALU/EUP there).
    """
    if stride != 1:
        # TODO(synk): stride==2 variant (downsample, no residual) not implemented.
        raise NotImplementedError("stride==2 path not implemented")

    w1f, w3f, packed = kernel_params
    N, Cin, H, W = x_nchw.shape
    Chid, Cout = w1f.shape[0], w3f.shape[0]
    HW = H * W
    use_res = (Cin == Cout)

    Nb = _choose_batch_block(N) if batch_block is None else batch_block
    assert N % Nb == 0
    L = Nb * HW
    n_steps = N // Nb
    cd = jnp.dtype(compute_dtype)

    # NCHW -> channels-major with batch folded into lanes: (Cin, N*HW).
    # (one tiny host-side transpose of the activation; inside the kernel every
    # tile is lane-dense -> unmasked vld/vst, fuller MXU pushes)
    x_cm = jnp.transpose(x_nchw.reshape(N, Cin, HW), (1, 0, 2)).reshape(Cin, N * HW)
    x_cm = x_cm.astype(cd)
    w1c = w1f.astype(cd)
    w3c = w3f.astype(cd)

    # Per-image row / col indices (shared by every batch block) -> border masks
    # are computed once in-kernel without integer div/mod.
    row = jnp.repeat(jnp.arange(H, dtype=jnp.int32), W)
    col = jnp.tile(jnp.arange(W, dtype=jnp.int32), H)
    rowcol = jnp.stack([jnp.tile(row, Nb), jnp.tile(col, Nb)])     # (2, L)

    kernel = make_kernel(H, W, Nb, Cin, Chid, Cout, use_res, cd)

    out = pl.pallas_call(
        kernel,
        out_shape=jax.ShapeDtypeStruct((Cout, N * HW), x_nchw.dtype),
        grid_spec=pltpu.PrefetchScalarGridSpec(
            num_scalar_prefetch=0,
            grid=(n_steps,),                      # batch blocks, independent
            in_specs=[
                pl.BlockSpec((2, L), lambda n: (0, 0)),            # rowcol
                pl.BlockSpec((Cin, L), lambda n: (0, n)),          # x block
                pl.BlockSpec((Chid, Cin), lambda n: (0, 0)),       # w1 (BN folded)
                pl.BlockSpec((Cout, Chid), lambda n: (0, 0)),      # w3 (BN folded)
                pl.BlockSpec(packed.shape, lambda n: (0, 0)),      # packed b1|taps|b2|b3
            ],
            out_specs=pl.BlockSpec((Cout, L), lambda n: (0, n)),
        ),
        compiler_params=pltpu.CompilerParams(
            dimension_semantics=("parallel",),
            # Safe within v7x's tighter (64 MiB physical / 32 MiB scoped) budget;
            # at production Chid/HW re-derive Nb against this limit (shrink Nb,
            # never the lane dim) or move intermediates to bf16 first.
            vmem_limit_bytes=32 * 1024 * 1024,
        ),
    )(rowcol, x_cm, w1c, w3c, packed)

    return jnp.transpose(out.reshape(Cout, N, HW), (1, 0, 2)).reshape(N, Cout, H, W)


# -------------------- parameter construction & reference ---------------------


def fold_bn(gamma, beta, mean, var, eps=1e-5):
    scale = gamma / jnp.sqrt(var + eps)
    shift = beta - mean * scale
    return scale, shift


def make_params(key, Cin, Cout, expand_ratio):
    Chid = Cin * expand_ratio
    ks = jax.random.split(key, 6)
    w1_t = 0.1 * jax.random.normal(ks[0], (Chid, Cin, 1, 1), jnp.float32)
    wdw_t = 0.1 * jax.random.normal(ks[1], (Chid, 1, 3, 3), jnp.float32)
    w3_t = 0.1 * jax.random.normal(ks[2], (Cout, Chid, 1, 1), jnp.float32)

    def bn(k, C):
        k1, k2, k3, k4 = jax.random.split(k, 4)
        gamma = 1.0 + 0.1 * jax.random.normal(k1, (C,), jnp.float32)
        beta = 0.1 * jax.random.normal(k2, (C,), jnp.float32)
        mean = 0.1 * jax.random.normal(k3, (C,), jnp.float32)
        var = jax.random.uniform(k4, (C,), jnp.float32, 0.5, 1.5)
        return gamma, beta, mean, var

    bn1, bn2, bn3 = bn(ks[3], Chid), bn(ks[4], Chid), bn(ks[5], Cout)
    s1, b1 = fold_bn(*bn1)
    s2, b2 = fold_bn(*bn2)
    s3, b3 = fold_bn(*bn3)

    # Fold BN scales into the conv weights once on the host.
    w1f = w1_t[:, :, 0, 0] * s1[:, None]                       # (Chid, Cin)
    wdwf = wdw_t[:, 0].reshape(Chid, 9) * s2[:, None]          # (Chid, 9), kh*3+kw
    w3f = w3_t[:, :, 0, 0] * s3[:, None]                       # (Cout, Chid)

    # Pack every per-channel parameter into a single (Cmax, 16) f32 tile:
    #   col 0 = b1, cols 1..9 = dw taps, col 10 = b2, col 11 = b3, rest padding.
    Cmax = max(Chid, Cout)
    packed = jnp.zeros((Cmax, 16), jnp.float32)
    packed = packed.at[:Chid, 0].set(b1)
    packed = packed.at[:Chid, 1:10].set(wdwf)
    packed = packed.at[:Chid, 10].set(b2)
    packed = packed.at[:Cout, 11].set(b3)

    kernel_params = (w1f, w3f, packed)
    torch_params = (w1_t, bn1, wdw_t, bn2, w3_t, bn3)
    return kernel_params, torch_params


def reference_forward(x, torch_params):
    """Pure-JAX NCHW reference matching the PyTorch module (eval-mode BN)."""
    w1_t, bn1, wdw_t, bn2, w3_t, bn3 = torch_params
    Chid = w1_t.shape[0]
    dn = ("NCHW", "OIHW", "NCHW")
    prec = lax.Precision.HIGHEST

    def bn_apply(y, bnp):
        g, b, m, v = bnp
        s, sh = fold_bn(g, b, m, v)
        return y * s[None, :, None, None] + sh[None, :, None, None]

    y = lax.conv_general_dilated(x, w1_t, (1, 1), "VALID",
                                 dimension_numbers=dn, precision=prec)
    y = _relu6(bn_apply(y, bn1))
    y = lax.conv_general_dilated(y, wdw_t, (1, 1), [(1, 1), (1, 1)],
                                 dimension_numbers=dn, feature_group_count=Chid,
                                 precision=prec)
    y = _relu6(bn_apply(y, bn2))
    y = lax.conv_general_dilated(y, w3_t, (1, 1), "VALID",
                                 dimension_numbers=dn, precision=prec)
    y = bn_apply(y, bn3)
    if x.shape[1] == w3_t.shape[0]:
        return x + y
    return y


if __name__ == "__main__":
    N, Cin, H, W = 2, 8, 16, 16
    Cout, expand_ratio = 8, 4          # inp == oup, stride == 1 -> residual path

    key = jax.random.PRNGKey(0)
    kx, kp = jax.random.split(key)
    x = jax.random.normal(kx, (N, Cin, H, W), jnp.float32)
    kernel_params, torch_params = make_params(kp, Cin, Cout, expand_ratio)

    ref = jax.block_until_ready(reference_forward(x, torch_params))

    # f32 compute path (also the right choice on v5e).
    out_f32 = jax.block_until_ready(inverted_residual_pallas(x, kernel_params))
    assert out_f32.shape == (N, Cout, H, W)
    err = float(jnp.max(jnp.abs(out_f32 - ref)))
    assert err < 5e-3, f"f32 path max abs err {err}"

    # bf16 activation/weight path with f32 accumulation (v6e / v7x fast path).
    out_bf16 = jax.block_until_ready(
        inverted_residual_pallas(x, kernel_params, compute_dtype=jnp.bfloat16))
    err_bf16 = float(jnp.max(jnp.abs(out_bf16 - ref)))
    assert err_bf16 < 1e-1, f"bf16 path max abs err {err_bf16}"

    print("KERNEL_OK")
</pallas_src>

<mosaic_0001>
module attributes {stable_mosaic.version = 11 : i64} {
  func.func @kernel(%arg0: i32, %arg1: memref<2x256xi32, #tpu.memory_space<vmem>>, %arg2: memref<8x256xf32, #tpu.memory_space<vmem>>, %arg3: memref<32x8xf32, #tpu.memory_space<vmem>>, %arg4: memref<8x32xf32, #tpu.memory_space<vmem>>, %arg5: memref<32x16xf32, #tpu.memory_space<vmem>>, %arg6: memref<8x256xf32, #tpu.memory_space<vmem>>) attributes {dimension_semantics = [#tpu.dimension_semantics<parallel>], iteration_bounds = array<i64: 2>, scalar_prefetch = 0 : i64, scratch_operands = 0 : i64, tpu.core_type = #tpu.core_type<tc>, window_params = [{pipeline_mode = #tpu.pipeline_mode<synchronous>, transform_indices = @transform_0, window_bounds = array<i64: 2, 256>}, {transform_indices = @transform_1, window_bounds = array<i64: 8, 256>}, {pipeline_mode = #tpu.pipeline_mode<synchronous>, transform_indices = @transform_2, window_bounds = array<i64: 32, 8>}, {pipeline_mode = #tpu.pipeline_mode<synchronous>, transform_indices = @transform_3, window_bounds = array<i64: 8, 32>}, {pipeline_mode = #tpu.pipeline_mode<synchronous>, transform_indices = @transform_4, window_bounds = array<i64: 32, 16>}, {transform_indices = @transform_5, window_bounds = array<i64: 8, 256>}]} {
    %c0 = arith.constant 0 : index
    %c0_0 = arith.constant 0 : index
    %0 = vector.load %arg1[%c0, %c0_0] : memref<2x256xi32, #tpu.memory_space<vmem>>, vector<1x256xi32>
    %c1 = arith.constant 1 : index
    %c0_1 = arith.constant 0 : index
    %1 = vector.load %arg1[%c1, %c0_1] : memref<2x256xi32, #tpu.memory_space<vmem>>, vector<1x256xi32>
    %c1_i32 = arith.constant 1 : i32
    %2 = vector.broadcast %c1_i32 : i32 to vector<1x256xi32>
    %3 = arith.cmpi sge, %1, %2 : vector<1x256xi32>
    %c14_i32 = arith.constant 14 : i32
    %4 = vector.broadcast %c14_i32 : i32 to vector<1x256xi32>
    %5 = arith.cmpi sle, %1, %4 : vector<1x256xi32>
    %c1_i32_2 = arith.constant 1 : i32
    %6 = vector.broadcast %c1_i32_2 : i32 to vector<1x256xi32>
    %7 = arith.cmpi sge, %0, %6 : vector<1x256xi32>
    %c14_i32_3 = arith.constant 14 : i32
    %8 = vector.broadcast %c14_i32_3 : i32 to vector<1x256xi32>
    %9 = arith.cmpi sle, %0, %8 : vector<1x256xi32>
    %c0_4 = arith.constant 0 : index
    %c0_5 = arith.constant 0 : index
    %10 = vector.load %arg2[%c0_4, %c0_5] : memref<8x256xf32, #tpu.memory_space<vmem>>, vector<8x256xf32>
    %c0_6 = arith.constant 0 : index
    %c0_7 = arith.constant 0 : index
    %11 = vector.load %arg3[%c0_6, %c0_7] : memref<32x8xf32, #tpu.memory_space<vmem>>, vector<32x8xf32>
    %cst = arith.constant dense<0.000000e+00> : vector<32x256xf32>
    %12 = tpu.matmul %11, %10, %cst {dimension_numbers = #tpu.dot_dimension_numbers<[1], [0], [0], [1], [0, 0, 1, 1], [], []>} : vector<32x8xf32>, vector<8x256xf32>, vector<32x256xf32> -> vector<32x256xf32>
    %c0_8 = arith.constant 0 : index
    %c0_9 = arith.constant 0 : index
    %13 = vector.load %arg5[%c0_8, %c0_9] : memref<32x16xf32, #tpu.memory_space<vmem>>, vector<32x1xf32>
    %14 = vector.broadcast %13 : vector<32x1xf32> to vector<32x256xf32>
    %15 = arith.addf %12, %14 : vector<32x256xf32>
    %cst_10 = arith.constant 0.000000e+00 : f32
    %16 = vector.broadcast %cst_10 : f32 to vector<32x256xf32>
    %17 = arith.maximumf %15, %16 : vector<32x256xf32>
    %cst_11 = arith.constant 6.000000e+00 : f32
    %18 = vector.broadcast %cst_11 : f32 to vector<32x256xf32>
    %19 = arith.minimumf %17, %18 : vector<32x256xf32>
    %cst_12 = arith.constant 0.000000e+00 : f32
    %20 = vector.broadcast %cst_12 : f32 to vector<32x256xf32>
    %c1_i32_13 = arith.constant 1 : i32
    %21 = tpu.dynamic_rotate %19 by %c1_i32_13 dim 1 : vector<32x256xf32>, i32 -> vector<32x256xf32>
    %22 = vector.shape_cast %3 : vector<1x256xi1> to vector<1x256xi1>
    %23 = vector.broadcast %22 : vector<1x256xi1> to vector<32x256xi1>
    %24 = arith.select %23, %21, %20 : vector<32x256xi1>, vector<32x256xf32>
    %c255_i32 = arith.constant 255 : i32
    %25 = tpu.dynamic_rotate %19 by %c255_i32 dim 1 : vector<32x256xf32>, i32 -> vector<32x256xf32>
    %26 = vector.shape_cast %5 : vector<1x256xi1> to vector<1x256xi1>
    %27 = vector.broadcast %26 : vector<1x256xi1> to vector<32x256xi1>
    %28 = arith.select %27, %25, %20 : vector<32x256xi1>, vector<32x256xf32>
    %c0_14 = arith.constant 0 : index
    %c1_15 = arith.constant 1 : index
    %29 = vector.load %arg5[%c0_14, %c1_15] : memref<32x16xf32, #tpu.memory_space<vmem>>, vector<32x1xf32>
    %30 = vector.broadcast %29 : vector<32x1xf32> to vector<32x256xf32>
    %31 = arith.mulf %30, %24 : vector<32x256xf32>
    %c0_16 = arith.constant 0 : index
    %c2 = arith.constant 2 : index
    %32 = vector.load %arg5[%c0_16, %c2] : memref<32x16xf32, #tpu.memory_space<vmem>>, vector<32x1xf32>
    %33 = vector.broadcast %32 : vector<32x1xf32> to vector<32x256xf32>
    %34 = arith.mulf %33, %19 : vector<32x256xf32>
    %35 = arith.addf %31, %34 : vector<32x256xf32>
    %c0_17 = arith.constant 0 : index
    %c3 = arith.constant 3 : index
    %36 = vector.load %arg5[%c0_17, %c3] : memref<32x16xf32, #tpu.memory_space<vmem>>, vector<32x1xf32>
    %37 = vector.broadcast %36 : vector<32x1xf32> to vector<32x256xf32>
    %38 = arith.mulf %37, %28 : vector<32x256xf32>
    %39 = arith.addf %35, %38 : vector<32x256xf32>
    %c0_18 = arith.constant 0 : index
    %c4 = arith.constant 4 : index
    %40 = vector.load %arg5[%c0_18, %c4] : memref<32x16xf32, #tpu.memory_space<vmem>>, vector<32x1xf32>
    %41 = vector.broadcast %40 : vector<32x1xf32> to vector<32x256xf32>
    %42 = arith.mulf %41, %24 : vector<32x256xf32>
    %c0_19 = arith.constant 0 : index
    %c5 = arith.constant 5 : index
    %43 = vector.load %arg5[%c0_19, %c5] : memref<32x16xf32, #tpu.memory_space<vmem>>, vector<32x1xf32>
    %44 = vector.broadcast %43 : vector<32x1xf32> to vector<32x256xf32>
    %45 = arith.mulf %44, %19 : vector<32x256xf32>
    %46 = arith.addf %42, %45 : vector<32x256xf32>
    %c0_20 = arith.constant 0 : index
    %c6 = arith.constant 6 : index
    %47 = vector.load %arg5[%c0_20, %c6] : memref<32x16xf32, #tpu.memory_space<vmem>>, vector<32x1xf32>
    %48 = vector.broadcast %47 : vector<32x1xf32> to vector<32x256xf32>
    %49 = arith.mulf %48, %28 : vector<32x256xf32>
    %50 = arith.addf %46, %49 : vector<32x256xf32>
    %c0_21 = arith.constant 0 : index
    %c7 = arith.constant 7 : index
    %51 = vector.load %arg5[%c0_21, %c7] : memref<32x16xf32, #tpu.memory_space<vmem>>, vector<32x1xf32>
    %52 = vector.broadcast %51 : vector<32x1xf32> to vector<32x256xf32>
    %53 = arith.mulf %52, %24 : vector<32x256xf32>
    %c0_22 = arith.constant 0 : index
    %c8 = arith.constant 8 : index
    %54 = vector.load %arg5[%c0_22, %c8] : memref<32x16xf32, #tpu.memory_space<vmem>>, vector<32x1xf32>
    %55 = vector.broadcast %54 : vector<32x1xf32> to vector<32x256xf32>
    %56 = arith.mulf %55, %19 : vector<32x256xf32>
    %57 = arith.addf %53, %56 : vector<32x256xf32>
    %c0_23 = arith.constant 0 : index
    %c9 = arith.constant 9 : index
    %58 = vector.load %arg5[%c0_23, %c9] : memref<32x16xf32, #tpu.memory_space<vmem>>, vector<32x1xf32>
    %59 = vector.broadcast %58 : vector<32x1xf32> to vector<32x256xf32>
    %60 = arith.mulf %59, %28 : vector<32x256xf32>
    %61 = arith.addf %57, %60 : vector<32x256xf32>
    %c16_i32 = arith.constant 16 : i32
    %62 = tpu.dynamic_rotate %39 by %c16_i32 dim 1 : vector<32x256xf32>, i32 -> vector<32x256xf32>
    %63 = vector.shape_cast %7 : vector<1x256xi1> to vector<1x256xi1>
    %64 = vector.broadcast %63 : vector<1x256xi1> to vector<32x256xi1>
    %65 = arith.select %64, %62, %20 : vector<32x256xi1>, vector<32x256xf32>
    %66 = arith.addf %50, %65 : vector<32x256xf32>
    %c240_i32 = arith.constant 240 : i32
    %67 = tpu.dynamic_rotate %61 by %c240_i32 dim 1 : vector<32x256xf32>, i32 -> vector<32x256xf32>
    %68 = vector.shape_cast %9 : vector<1x256xi1> to vector<1x256xi1>
    %69 = vector.broadcast %68 : vector<1x256xi1> to vector<32x256xi1>
    %70 = arith.select %69, %67, %20 : vector<32x256xi1>, vector<32x256xf32>
    %71 = arith.addf %66, %70 : vector<32x256xf32>
    %c0_24 = arith.constant 0 : index
    %c10 = arith.constant 10 : index
    %72 = vector.load %arg5[%c0_24, %c10] : memref<32x16xf32, #tpu.memory_space<vmem>>, vector<32x1xf32>
    %73 = vector.broadcast %72 : vector<32x1xf32> to vector<32x256xf32>
    %74 = arith.addf %71, %73 : vector<32x256xf32>
    %cst_25 = arith.constant 0.000000e+00 : f32
    %75 = vector.broadcast %cst_25 : f32 to vector<32x256xf32>
    %76 = arith.maximumf %74, %75 : vector<32x256xf32>
    %cst_26 = arith.constant 6.000000e+00 : f32
    %77 = vector.broadcast %cst_26 : f32 to vector<32x256xf32>
    %78 = arith.minimumf %76, %77 : vector<32x256xf32>
    %c0_27 = arith.constant 0 : index
    %c0_28 = arith.constant 0 : index
    %79 = vector.load %arg4[%c0_27, %c0_28] : memref<8x32xf32, #tpu.memory_space<vmem>>, vector<8x32xf32>
    %cst_29 = arith.constant dense<0.000000e+00> : vector<8x256xf32>
    %80 = tpu.matmul %79, %78, %cst_29 {dimension_numbers = #tpu.dot_dimension_numbers<[1], [0], [0], [1], [0, 0, 1, 1], [], []>} : vector<8x32xf32>, vector<32x256xf32>, vector<8x256xf32> -> vector<8x256xf32>
    %c0_30 = arith.constant 0 : index
    %c11 = arith.constant 11 : index
    %81 = vector.load %arg5[%c0_30, %c11] : memref<32x16xf32, #tpu.memory_space<vmem>>, vector<8x1xf32>
    %82 = vector.broadcast %81 : vector<8x1xf32> to vector<8x256xf32>
    %83 = arith.addf %80, %82 : vector<8x256xf32>
    %84 = arith.addf %83, %10 : vector<8x256xf32>
    %c0_31 = arith.constant 0 : index
    %c0_32 = arith.constant 0 : index
    %85 = vector.load %arg6[%c0_31, %c0_32] : memref<8x256xf32, #tpu.memory_space<vmem>>, vector<8x256xf32>
    tpu.vector_store %arg6[%c0_31, %c0_32], %84 {strides = array<i32>} : memref<8x256xf32, #tpu.memory_space<vmem>>, vector<8x256xf32>,
    return
  }
  func.func @transform_0(%arg0: i32) -> (i32, i32) {
    %c0_i32 = arith.constant 0 : i32
    %c0_i32_0 = arith.constant 0 : i32
    %c0_i32_1 = arith.constant 0 : i32
    return %c0_i32, %c0_i32_0 : i32, i32
  }
  func.func @transform_1(%arg0: i32) -> (i32, i32) {
    %c0_i32 = arith.constant 0 : i32
    %c0_i32_0 = arith.constant 0 : i32
    return %c0_i32, %arg0 : i32, i32
  }
  func.func @transform_2(%arg0: i32) -> (i32, i32) {
    %c0_i32 = arith.constant 0 : i32
    %c0_i32_0 = arith.constant 0 : i32
    %c0_i32_1 = arith.constant 0 : i32
    return %c0_i32, %c0_i32_0 : i32, i32
  }
  func.func @transform_3(%arg0: i32) -> (i32, i32) {
    %c0_i32 = arith.constant 0 : i32
    %c0_i32_0 = arith.constant 0 : i32
    %c0_i32_1 = arith.constant 0 : i32
    return %c0_i32, %c0_i32_0 : i32, i32
  }
  func.func @transform_4(%arg0: i32) -> (i32, i32) {
    %c0_i32 = arith.constant 0 : i32
    %c0_i32_0 = arith.constant 0 : i32
    %c0_i32_1 = arith.constant 0 : i32
    return %c0_i32, %c0_i32_0 : i32, i32
  }
  func.func @transform_5(%arg0: i32) -> (i32, i32) {
    %c0_i32 = arith.constant 0 : i32
    %c0_i32_0 = arith.constant 0 : i32
    return %c0_i32, %arg0 : i32, i32
  }
}

</mosaic_0001>

<bundles_post_ra>
// kernel: tpu_custom_call.1
= control target key start
LH: loop header
LB: loop body
LE: loop exit
PB: predicated region body
PF: predicated region fallthrough
CT: control target
= control target key end

     0   :  { %10 = vsyncpa [#allocation3], 0  ;;  %s1937_s0 = inlined_call_operand.vmem [shape: s32[2,256], index: 0, kind: input, shape index: {}]   ;;  %s1938_s1 = inlined_call_operand.vmem [shape: f32[8,512], index: 1, kind: input, shape index: {}]   ;;  %s1939_s2 = inlined_call_operand.vmem [shape: f32[32,8], index: 2, kind: input, shape index: {}]   ;;  %s1940_s3 = inlined_call_operand.vmem [shape: f32[8,32], index: 3, kind: input, shape index: {}]   ;;  %s1941_s4 = inlined_call_operand.vmem [shape: f32[32,16], index: 4, kind: input, shape index: {}]   ;;  %s1942_s5 = inlined_call_operand.hbm [shape: f32[8,512], index: 5, kind: output, shape index: {}]  }
   0x1   :  { %12 = vsyncpa [#allocation3 + $0x1], 0  ;;  %s1267_s18 = smov 0   ;;  %s1269_s19 = smov 0  }
   0x2   :  { %s1271_s20 = smov 0   ;;  %s1273_s21 = smov 0  }
   0x3 LB: > { %s1288_s22 = sadd.s32 4294967295, %s1217_s21   ;;  %s1039_s23 = sadd.s32 4294967294, %s1217_s21   ;;  %s1217_s21 = sphi %s1273_s21, %s1964_s21   ;;  %s1213_s20 = sphi %s1271_s20, %s1963_s20   ;;  %s1209_s19 = sphi %s1269_s19, %s1962_s19   ;;  %s1205_s18 = sphi %s1267_s18, %s1961_s18  }
   0x4   : > { %s1292_s24 = sadd.s32 1, %s1217_s21   ;;  %s135_s25 = sadd.s32 1, %s1213_s20 }
   0x5   : > { %s132_s26 = ssub.s32 %s1217_s21, %s1292_s24  ;;  %p145_p0 = scmp.ne.s32.totalorder %s1213_s20, %s1209_s19 }
   0x6   : > { %p133_p1 = scmp.eq.s32.totalorder %s132_s26, 0  ;;  %p146_p2 = scmp.eq.s32.totalorder %s1288_s22, 1 }
   0x7   : > { %p151_p3 = scmp.ne.s32.totalorder %s1209_s19, %s1205_s18  ;;  %p152_p4 = scmp.eq.s32.totalorder %s1039_s23, 1 }
   0x8   : > { %s1303_s27 = scalar_select %p133_p1, %s1213_s20, %s135_s25  }
   0x9   : > { %p1305_p5 = por %p146_p2, %p145_p0  ;;  %p1309_p6 = por %p152_p4, %p151_p3 }
   0xa   : > { %p1042_p7 = scmp.ge.s32.totalorder %s1217_s21, 1  ;;  %p191_p8 = scmp.lt.s32.totalorder %s1217_s21, 3 }
   0xc   : > { %p192_p9 = pnand %p1042_p7, %p191_p8 }
   0xd   : > { %s1044_s30 = sshll.u32 (!%p192_p9), %s1288_s22, 1  ;;  %v1219_v0 = vmov (!%p192_p9), 0.0   ;;  %v1319_v1 = vld [vmem:[%s1941_s4 + $0x10] sm:$0xff] (!%p192_p9)  ;;  %v1220_v2 = vmov (!%p192_p9), 0   ;;  %v1325_v3 = vld [vmem:[%s1941_s4] sm:$0xff] (!%p192_p9)  ;;  %v1333_v4 = vld [vmem:[%s1941_s4 + $0x18] sm:$0xff] (!%p192_p9) }
   0xe   : > { %195 = sbr.rel (%p192_p9) target bundleno = 772 (0x304), region = 40  ;;  %p220_p10 = scmp.lt.s32.totalorder (!%p192_p9), %s1044_s30, 3  ;;  %340 = vmatprep.mubr.f32.mxu0 (!%p192_p9), %v1219_v0  ;;  %954 = vmatprep.mubr.f32.mxu1 (!%p192_p9), %v1219_v0  ;;  %v1343_v5 = vld [vmem:[%s1941_s4 + $0x8] sm:$0xff] (!%p192_p9)  ;;  %v235_v8 = vld [vmem:[%s1939_s2] sm:$0xff] (!%p192_p9)  ;;  %vm263_vm0 = vcmask (!%p192_p9), 64512   ;;  %v1221_v10 = vmov (!%p192_p9), 1  }
   0xf   : > { %1123 = vset.pattern.permute.xlu1 (!%p192_p9), %v1220_v2  ;;  %1122 = vset.pattern.permute.xlu0 (!%p192_p9), %v1220_v2  ;;  %v236_v9 = vld [vmem:[%s1939_s2 + $0x8] sm:$0xff] (!%p192_p9)  ;;  %v237_v11 = vld [vmem:[%s1939_s2 + $0x10] sm:$0xff] (!%p192_p9)  ;;  %v1222_v12 = vmov (!%p192_p9), 2   ;;  %v1223_v13 = vmov (!%p192_p9), 8   ;;  %v238_v14 = vld [vmem:[%s1939_s2 + $0x18] sm:$0xff] (!%p192_p9)  ;;  %v1224_v15 = vmov (!%p192_p9), 3  }
  0x10   : > { %255 = vperm.xlu1 (!%p192_p9), %1123, %v1319_v1   ;;  %245 = vperm.xlu0 (!%p192_p9), %1122, %v1325_v3   ;;  %v1225_v16 = vmov (!%p192_p9), 7   ;;  %v1226_v17 = vmov (!%p192_p9), 9   ;;  %v1227_v18 = vmov (!%p192_p9), 4   ;;  %s1228_s10 = smov (!%p192_p9), 127   ;;  %s1229_s11 = smov (!%p192_p9), 1   ;;  %v1230_v57 = vmov (!%p192_p9), 6  }
  0x11   : > { %v1231_v59 = vmov (!%p192_p9), 5   ;;  %v1232_v61 = vmov (!%p192_p9), 10   ;;  %s1233_s14 = smov (!%p192_p9), 16   ;;  %s1234_s16 = smov (!%p192_p9), 112  }
  0x12   : > { %s1057_s7 = sshll.u32 (!%p192_p9), %s1288_s22, 8 }
  0x14   : > { %260 = vperm.xlu1 (!%p192_p9), %1123, %v1333_v4   ;;  %250 = vperm.xlu0 (!%p192_p9), %1122, %v1343_v5  }
  0x15   : > { %s1966_s30 = smov (!%p220_p10, %s1044_s30), 3 }
  0x16   : > { %s1045_s12 = sshll.u32 %s1966_s30, 3  ;;  %s216_s30 = sand.u32 1, %s1209_s19  }
  0x17   : > { %s1338_s15 = scalar_lea.vmem %s1938_s1, %s1045_s12  ;;  %s1043_s6 = sshll.u32 %s216_s30, 4 }
  0x18   : > { %v234_v6 = vld [vmem:[%s1338_s15 + $0x8] sm:$0xff]  ;;  %v233_v7 = vld [vmem:[%s1338_s15] sm:$0xff]  ;;  %1125 = vset.pattern.permute.xlu1 %v1221_v10  ;;  %1124 = vset.pattern.permute.xlu0 %v1221_v10  ;;  %s218_s8 = scalar_lea.vmem [#allocation2], %s1043_s6  ;;  %s1895_s12 = scalar_lea.hbm %s1942_s5, %s1057_s7 }
  0x19   : > { %276 = vmatprep.subr.mxu0 %v234_v6  ;;  %476 = vperm.xlu1 %1125, %v1343_v5   ;;  %s980_s9 = sshll.u32 %s218_s8, 4  ;;  %s966_s22 = scalar_lea.sflag [#allocation3], %s216_s30  ;;  %s1897_s9 = int_to_ptr.vmem [resolvable:$true] %s980_s9 }
  0x1a   : > { %277 = vmatpush1.msra.mxu0 %v233_v7  ;;  %472 = vperm.xlu0 %1124, %v1325_v3   ;;  %s1155_s13 = scalar_lea.vmem %s1897_s9, 256 }
  0x1b   : > { %1047 = vmatmul.mubr.msk.f32.vlgmr.msra.gmra.mrb[0].mxu0 %vm263_vm0, %v235_v8  ;;  %p1156_p11 = scmp.ne.s32.totalorder %s1897_s9, %s1155_s13 }
  0x1c   : > { %346 = vmatprep.mubr.f32.mxu0 %v1219_v0 }
  0x1d   : > { %1126 = vset.pattern.permute.xlu1 %v1222_v12  ;;  %p1157_p12 = pnand %p1156_p11, %p1305_p5 }
  0x1e   : > { %496 = vperm.xlu1 %1126, %v1325_v3   ;;  %1130 = vset.pattern.permute.xlu0 %v1223_v13 }
  0x1f   : > { %1048 = vmatmul.mubr.msk.f32.gmra.mrb[2].mxu0 %vm263_vm0, %v236_v9  ;;  %676 = vperm.xlu0 %1130, %v1343_v5   ;;  %p1158_p13 = pneg %p1157_p12 }
  0x20   : > { %352 = vmatprep.mubr.f32.mxu0 %v1219_v0 }
  0x22   : > { %1127 = vset.pattern.permute.xlu1 %v1224_v15 }
  0x23   : > { %1049 = vmatmul.mubr.msk.f32.gmra.mrb[4].mxu0 %vm263_vm0, %v237_v11  ;;  %528 = vperm.xlu1 %1127, %v1325_v3  }
  0x24   : > { %358 = vmatprep.mubr.f32.mxu0 %v1219_v0  ;;  %1131 = vset.pattern.permute.xlu0 %v1222_v12 }
  0x25   : > { %500 = vperm.xlu0 %1131, %v1343_v5  }
  0x27   : > { %1050 = vmatmul.mubr.msk.f32.gmra.mrb[6].mxu0 %vm263_vm0, %v238_v14  ;;  %532 = vperm.xlu1 %1127, %v1343_v5  }
  0x29   : > { %504 = vperm.xlu0 %1131, %v1319_v1  }
  0x2b   : > { %1128 = vset.pattern.permute.xlu1 %v1225_v16 }
  0x2c   : > { %652 = vperm.xlu1 %1128, %v1343_v5  }
  0x2d   : > { %1135 = vset.pattern.permute.xlu0 %v1224_v15 }
  0x2e   : > { %536 = vperm.xlu0 %1135, %v1319_v1  }
  0x30   : > { %1129 = vset.pattern.permute.xlu1 %v1223_v13 }
  0x31   : > { %672 = vperm.xlu1 %1129, %v1325_v3  }
  0x32   : > { %1136 = vset.pattern.permute.xlu0 %v1225_v16 }
  0x33   : > { %648 = vperm.xlu0 %1136, %v1325_v3  }
  0x35   : > { %1132 = vset.pattern.permute.xlu1 %v1221_v10 }
  0x36   : > { %480 = vperm.xlu1 %1132, %v1319_v1  }
  0x37   : > { %660 = vperm.xlu0 %1136, %v1333_v4  }
  0x3a   : > { %484 = vperm.xlu1 %1132, %v1333_v4  }
  0x3b   : > { %1139 = vset.pattern.permute.xlu0 %v1226_v17 }
  0x3c   : > { %708 = vperm.xlu0 %1139, %v1343_v5  }
  0x3e   : > { %1133 = vset.pattern.permute.xlu1 %v1222_v12 }
  0x3f   : > { %508 = vperm.xlu1 %1133, %v1333_v4  }
  0x40   : > { %712 = vperm.xlu0 %1139, %v1319_v1  }
  0x43   : > { %1134 = vset.pattern.permute.xlu1 %v1226_v17 }
  0x44   : > { %704 = vperm.xlu1 %1134, %v1325_v3   ;;  %1143 = vset.pattern.permute.xlu0 %v1227_v18 }
  0x48   : > { %1137 = vset.pattern.permute.xlu1 %v1224_v15 }
  0x49   : > { %540 = vperm.xlu1 %1137, %v1333_v4  }
  0x4d   : > { %1138 = vset.pattern.permute.xlu1 %v1225_v16 }
  0x4e   : > { %656 = vperm.xlu1 %1138, %v1319_v1  }
  0x52   : > { %1140 = vset.pattern.permute.xlu1 %v1223_v13 }
  0x53   : > { %680 = vperm.xlu1 %1140, %v1319_v1  }
  0x57   : > { %684 = vperm.xlu1 %1140, %v1333_v4  }
  0x5b   : > { %1141 = vset.pattern.permute.xlu1 %v1226_v17  ;;  %v397_v17 = vlaneseq }
  0x5c   : > { %716 = vperm.xlu1 %1141, %v1333_v4  }
  0x60   : > { %1142 = vset.pattern.permute.xlu1 %v1227_v18 }
  0x8f   : > { %v246_v19 = vpop.permute.xlu0 %245  ;;  %v256_v31 = vpop.permute.xlu1 %255 }
  0x93   : > { %v251_v25 = vpop.permute.xlu0 %250  ;;  %v261_v38 = vpop.permute.xlu1 %260 }
  0x98   : > { %v1433_v54 = vpop.permute.xlu1 %476 }
  0x99   : > { %v473_v6 = vpop.permute.xlu0 %472 }
  0x9d   : > { %v1440_v56 = vpop.permute.xlu1 %496 }
  0xa2   : > { %v1447_v58 = vpop.permute.xlu1 %528 }
  0xa6   : > { %v1451_v60 = vpop.permute.xlu1 %532 }
  0xab   : > { %v1455_v62 = vpop.permute.xlu1 %652 }
  0xb0   : > { %v1461_v63 = vpop.permute.xlu1 %672 }
  0xb5   : > { %v1464_v0 = vpop.permute.xlu1 %480 }
  0xb9   : > { %v1467_v7 = vpop.permute.xlu1 %484 }
  0xbe   : > { %v1472_v8 = vpop.permute.xlu1 %508 }
  0xee   : > { %v342_v20 = vpop.f32.mrb[0].mxu0 }
  0xef   : > { %v343_v21 = vadd.f32 %v342_v20, %v246_v19  ;;  %v344_v22 = vpop.f32.mrb[1].mxu0  ;;  %v410_v20 = vshrl.u32 %v397_v17, 7 }
  0xf0   : > { %v345_v23 = vadd.f32 %v344_v22, %v246_v19 }
  0xf1   : > { %v365_v24 = vmax.f32 %v343_v21, 0.0 }
  0xf2   : > { %v348_v26 = vpop.f32.mrb[2].mxu0  ;;  %v366_v28 = vmax.f32 %v345_v23, 0.0  ;;  %v1503_v23 = vsub.s32 0, %v410_v20 }
  0xf3   : > { %v1391_v27 = vmin.f32 %v365_v24, 6.0  ;;  %v349_v29 = vadd.f32 %v348_v26, %v251_v25  ;;  %v350_v30 = vpop.f32.mrb[3].mxu0  ;;  %v1505_v24 = vsub.s32 1, %v410_v20  ;;  %v1508_v26 = vand.u32 127, %v397_v17 }
  0xf4   : > { %v1397_v34 = vmin.f32 %v366_v28, 6.0  ;;  %v351_v36 = vadd.f32 %v350_v30, %v251_v25 }
  0xf5   : > { %v367_v32 = vmax.f32 %v349_v29, 0.0  ;;  %427 = vrot.lane.b32.xlu0 %v1391_v27, %s1228_s10  ;;  %381 = vrot.lane.b32.xlu1 %v1391_v27, %s1229_s11  ;;  %vm399_vm3 = vcmp.lt.s32.totalorder %v1508_v26, 1  ;;  %vm443_vm6 = vcmp.lt.s32.totalorder %v1508_v26, 127  ;;  %vm751_vm11 = vcmp.lt.s32.totalorder %v1508_v26, 16 }
  0xf6   : > { %v354_v33 = vpop.f32.mrb[4].mxu0  ;;  %v368_v40 = vmax.f32 %v351_v36, 0.0  ;;  %v512_v17 = vmul.f32 %v1440_v56, %v1397_v34  ;;  %vm803_vm12 = vcmp.lt.s32.totalorder %v1508_v26, 112 }
  0xf7   : > { %v1399_v35 = vmin.f32 %v367_v32, 6.0  ;;  %v356_v37 = vpop.f32.mrb[5].mxu0  ;;  %v355_v45 = vadd.f32 %v354_v33, %v256_v31 }
  0xf8   : > { %v1409_v44 = vmin.f32 %v368_v40, 6.0  ;;  %v357_v51 = vadd.f32 %v356_v37, %v256_v31 }
  0xf9   : > { %389 = vrot.lane.b32.xlu0 %v1397_v34, %s1229_s11  ;;  %383 = vrot.lane.b32.xlu1 %v1399_v35, %s1229_s11  ;;  %v369_v48 = vmax.f32 %v355_v45, 0.0 }
  0xfa   : > { %v360_v39 = vpop.f32.mrb[6].mxu0  ;;  %v370_v53 = vmax.f32 %v357_v51, 0.0 }
  0xfb   : > { %v361_v41 = vadd.f32 %v360_v39, %v261_v38  ;;  %v362_v42 = vpop.f32.mrb[7].mxu0  ;;  %v1421_v50 = vmin.f32 %v369_v48, 6.0 }
  0xfc   : > { %v363_v47 = vadd.f32 %v362_v42, %v261_v38  ;;  %v1435_v55 = vmin.f32 %v370_v53, 6.0 }
  0xfd   : > { %v371_v43 = vmax.f32 %v361_v41, 0.0  ;;  %435 = vrot.lane.b32.xlu0 %v1397_v34, %s1228_s10  ;;  %429 = vrot.lane.b32.xlu1 %v1399_v35, %s1228_s10 }
  0xfe   : > { %v372_v49 = vmax.f32 %v363_v47, 0.0 }
  0xff   : > { %v1411_v46 = vmin.f32 %v371_v43, 6.0 }
 0x100   : > { %v1423_v52 = vmin.f32 %v372_v49, 6.0 }
 0x101   : > { %387 = vrot.lane.b32.xlu0 %v1411_v46, %s1229_s11  ;;  %391 = vrot.lane.b32.xlu1 %v1409_v44, %s1229_s11 }
 0x105   : > { %433 = vrot.lane.b32.xlu0 %v1411_v46, %s1228_s10  ;;  %437 = vrot.lane.b32.xlu1 %v1409_v44, %s1228_s10 }
 0x109   : > { %395 = vrot.lane.b32.xlu0 %v1423_v52, %s1229_s11  ;;  %385 = vrot.lane.b32.xlu1 %v1421_v50, %s1229_s11 }
 0x10d   : > { %441 = vrot.lane.b32.xlu0 %v1423_v52, %s1228_s10  ;;  %431 = vrot.lane.b32.xlu1 %v1421_v50, %s1228_s10 }
 0x111   : > { %564 = vperm.xlu0 %1143, %v1343_v5   ;;  %393 = vrot.lane.b32.xlu1 %v1435_v55, %s1229_s11 }
 0x115   : > { %572 = vperm.xlu0 %1143, %v1333_v4   ;;  %439 = vrot.lane.b32.xlu1 %v1435_v55, %s1228_s10 }
 0x119   : > { %1147 = vset.pattern.permute.xlu0 %v1230_v57  ;;  %560 = vperm.xlu1 %1142, %v1325_v3  }
 0x11a   : > { %616 = vperm.xlu0 %1147, %v1325_v3  }
 0x11d   : > { %1144 = vset.pattern.permute.xlu1 %v1231_v59 }
 0x11e   : > { %624 = vperm.xlu0 %1147, %v1319_v1   ;;  %584 = vperm.xlu1 %1144, %v1325_v3  }
 0x122   : > { %588 = vperm.xlu1 %1144, %v1343_v5   ;;  %1151 = vset.pattern.permute.xlu0 %v1232_v61 }
 0x123   : > { %844 = vperm.xlu0 %1151, %v1343_v5  }
 0x126   : > { %1145 = vset.pattern.permute.xlu1 %v1230_v57 }
 0x127   : > { %620 = vperm.xlu1 %1145, %v1343_v5   ;;  %848 = vperm.xlu0 %1151, %v1319_v1   ;;  %v1470_v5 = vpop.permute.xlu0 %676 }
 0x12b   : > { %1146 = vset.pattern.permute.xlu1 %v1227_v18  ;;  %v1475_v9 = vpop.permute.xlu0 %500 }
 0x12c   : > { %568 = vperm.xlu1 %1146, %v1319_v1  }
 0x12f   : > { %v1480_v10 = vpop.permute.xlu0 %504 }
 0x130   : > { %1148 = vset.pattern.permute.xlu1 %v1231_v59 }
 0x131   : > { %592 = vperm.xlu1 %1148, %v1319_v1   ;;  %v1478_v1 = vpop.permute.xlu1 %704 }
 0x133   : > { %v1482_v11 = vpop.permute.xlu0 %536 }
 0x135   : > { %596 = vperm.xlu1 %1148, %v1333_v4   ;;  %v1484_v12 = vpop.permute.xlu1 %540 }
 0x137   : > { %v649_v13 = vpop.permute.xlu0 %648 }
 0x139   : > { %1149 = vset.pattern.permute.xlu1 %v1230_v57  ;;  %v1486_v14 = vpop.permute.xlu1 %656 }
 0x13a   : > { %628 = vperm.xlu1 %1149, %v1333_v4  }
 0x13b   : > { %v1488_v15 = vpop.permute.xlu0 %660 }
 0x13d   : > { %v1490_v16 = vpop.permute.xlu1 %680 }
 0x13e   : > { %1150 = vset.pattern.permute.xlu1 %v1232_v61 }
 0x13f   : > { %840 = vperm.xlu1 %1150, %v1325_v3   ;;  %v1492_v18 = vpop.permute.xlu0 %708 }
 0x141   : > { %v1494_v19 = vpop.permute.xlu1 %684 }
 0x143   : > { %852 = vperm.xlu1 %1150, %v1333_v4   ;;  %v1046_v4 = vld [vmem:[%s1937_s0 + $0x1] ss:$2 sm:$0x3]  ;;  %v1501_v22 = vpop.permute.xlu0 %712 }
 0x144   : > { %vm229_vm1 = vcmp.ge.s32.totalorder %v1046_v4, 1  ;;  %vm230_vm2 = vcmp.le.s32.totalorder %v1046_v4, 14 }
 0x145   : > { %v1499_v21 = vpop.permute.xlu1 %716  ;;  %v408_v25 = vsel %vm229_vm1, 1, %v1220_v2  ;;  %v452_v32 = vsel %vm230_vm2, 1, %v1220_v2  ;;  %vm886_vm1 = vcmask 261120  }
 0x146   : > { %v412_v28 = vrot.slane %v408_v25, %v1503_v23  ;;  %v416_v29 = vrot.slane %v408_v25, %v1505_v24  ;;  %v456_v37 = vrot.slane %v452_v32, %v1503_v23  ;;  %v460_v38 = vrot.slane %v452_v32, %v1505_v24 }
 0x148   : > { %vm1514_vm4 = vcmp.eq.s32.totalorder %v412_v28, 1  ;;  %vm1518_vm5 = vcmp.eq.s32.totalorder %v416_v29, 1  ;;  %vm1539_vm7 = vcmp.eq.s32.totalorder %v456_v37, 1  ;;  %vm1543_vm8 = vcmp.eq.s32.totalorder %v460_v38, 1 }
 0x149   : > { %v687_v37 = vmul.f32 %v1461_v63, %v1391_v27 }
 0x167   : > { %v428_v30 = vpop.permute.xlu0 %427  ;;  %v382_v31 = vpop.permute.xlu1 %381 }
 0x16b   : > { %v390_v39 = vpop.permute.xlu0 %389  ;;  %v384_v40 = vpop.permute.xlu1 %383 }
 0x16c   : > { %v400_v41 = vsel %vm399_vm3, %v382_v31, %v390_v39  ;;  %v404_v42 = vsel %vm399_vm3, %v390_v39, %v382_v31 }
 0x16d   : > { %v1530_v43 = vsel %vm1514_vm4, %v404_v42, 0.0  ;;  %v1534_v45 = vsel %vm1518_vm5, %v400_v41, 0.0 }
 0x16e   : > { %v487_v47 = vmul.f32 %v473_v6, %v1530_v43  ;;  %v488_v48 = vmul.f32 %v473_v6, %v1534_v45  ;;  %v511_v6 = vmul.f32 %v1440_v56, %v1391_v27  ;;  %v663_v4 = vmul.f32 %v649_v13, %v1530_v43 }
 0x16f   : > { %v436_v53 = vpop.permute.xlu0 %435  ;;  %v430_v57 = vpop.permute.xlu1 %429 }
 0x170   : > { %v444_v59 = vsel %vm443_vm6, %v428_v30, %v436_v53  ;;  %v448_v61 = vsel %vm443_vm6, %v436_v53, %v428_v30  ;;  %v520_v30 = vadd.f32 %v512_v17, %v488_v48  ;;  %v519_v31 = vadd.f32 %v511_v6, %v487_v47 }
 0x171   : > { %v1558_v20 = vsel %vm1539_vm7, %v444_v59, 0.0  ;;  %v1562_v25 = vsel %vm1543_vm8, %v448_v61, 0.0  ;;  %v664_v47 = vmul.f32 %v649_v13, %v1534_v45  ;;  %v695_v59 = vadd.f32 %v687_v37, %v663_v4 }
 0x172   : > { %v543_v28 = vmul.f32 %v1447_v58, %v1558_v20  ;;  %v544_v29 = vmul.f32 %v1447_v58, %v1562_v25  ;;  %v719_v38 = vmul.f32 %v1478_v1, %v1558_v20  ;;  %v513_v61 = vmul.f32 %v1475_v9, %v1399_v35 }
 0x173   : > { %v388_v32 = vpop.permute.xlu0 %387  ;;  %v392_v56 = vpop.permute.xlu1 %391  ;;  %v720_v17 = vmul.f32 %v1478_v1, %v1562_v25  ;;  %v688_v13 = vmul.f32 %v1461_v63, %v1397_v34 }
 0x174   : > { %v405_v39 = vsel %vm399_vm3, %v392_v56, %v384_v40  ;;  %v552_v41 = vadd.f32 %v544_v29, %v520_v30  ;;  %v551_v42 = vadd.f32 %v543_v28, %v519_v31  ;;  %v401_v53 = vsel %vm399_vm3, %v384_v40, %v392_v56 }
 0x175   : > { %v1578_v58 = vsel %vm1514_vm4, %v405_v39, 0.0  ;;  %v1593_v28 = vsel %vm1518_vm5, %v401_v53, 0.0  ;;  %v727_v30 = vadd.f32 %v719_v38, %v695_v59  ;;  %v696_v56 = vadd.f32 %v688_v13, %v664_v47 }
 0x176   : > { %v489_v48 = vmul.f32 %v1433_v54, %v1578_v58  ;;  %743 = vrot.lane.b32.xlu0 %v552_v41, %s1233_s14  ;;  %735 = vrot.lane.b32.xlu1 %v551_v42, %s1233_s14  ;;  %v514_v53 = vmul.f32 %v1475_v9, %v1409_v44  ;;  %v666_v13 = vmul.f32 %v1455_v62, %v1593_v28 }
 0x177   : > { %v434_v40 = vpop.permute.xlu0 %433  ;;  %v438_v6 = vpop.permute.xlu1 %437  ;;  %v728_v41 = vadd.f32 %v720_v17, %v696_v56 }
 0x178   : > { %v445_v4 = vsel %vm443_vm6, %v430_v57, %v438_v6  ;;  %v449_v29 = vsel %vm443_vm6, %v438_v6, %v430_v57  ;;  %v521_v37 = vadd.f32 %v513_v61, %v489_v48  ;;  %v490_v57 = vmul.f32 %v1433_v54, %v1593_v28 }
 0x179   : > { %v1601_v1 = vsel %vm1539_vm7, %v445_v4, 0.0  ;;  %v1605_v31 = vsel %vm1543_vm8, %v449_v29, 0.0  ;;  %v665_v6 = vmul.f32 %v1455_v62, %v1578_v58  ;;  %v689_v61 = vmul.f32 %v1470_v5, %v1399_v35 }
 0x17a   : > { %v545_v63 = vmul.f32 %v1451_v60, %v1601_v1  ;;  %787 = vrot.lane.b32.xlu0 %v727_v30, %s1234_s16  ;;  %v546_v59 = vmul.f32 %v1451_v60, %v1605_v31  ;;  %v522_v48 = vadd.f32 %v514_v53, %v490_v57  ;;  %v721_v17 = vmul.f32 %v1492_v18, %v1601_v1 }
 0x17b   : > { %v396_v38 = vpop.permute.xlu0 %395  ;;  %v386_v39 = vpop.permute.xlu1 %385  ;;  %v697_v30 = vadd.f32 %v689_v61, %v665_v6  ;;  %v722_v57 = vmul.f32 %v1492_v18, %v1605_v31  ;;  %v515_v53 = vmul.f32 %v1480_v10, %v1421_v50 }
 0x17c   : > { %v553_v42 = vadd.f32 %v545_v63, %v521_v37  ;;  %v407_v9 = vsel %vm399_vm3, %v396_v38, %v388_v32  ;;  %v554_v60 = vadd.f32 %v546_v59, %v522_v48  ;;  %v690_v63 = vmul.f32 %v1470_v5, %v1409_v44 }
 0x17d   : > { %v1635_v56 = vsel %vm1514_vm4, %v407_v9, 0.0  ;;  %v729_v5 = vadd.f32 %v721_v17, %v697_v30 }
 0x17e   : > { %795 = vrot.lane.b32.xlu0 %v728_v41, %s1234_s16  ;;  %737 = vrot.lane.b32.xlu1 %v553_v42, %s1233_s14  ;;  %v403_v41 = vsel %vm399_vm3, %v388_v32, %v396_v38  ;;  %v493_v18 = vmul.f32 %v1467_v7, %v1635_v56  ;;  %v698_v6 = vadd.f32 %v690_v63, %v666_v13 }
 0x17f   : > { %v432_v47 = vpop.permute.xlu1 %431  ;;  %v442_v54 = vpop.permute.xlu0 %441  ;;  %v1668_v48 = vsel %vm1518_vm5, %v403_v41, 0.0  ;;  %v516_v63 = vmul.f32 %v1480_v10, %v1435_v55  ;;  %v669_v10 = vmul.f32 %v1488_v15, %v1635_v56 }
 0x180   : > { %v447_v4 = vsel %vm443_vm6, %v434_v40, %v442_v54  ;;  %v451_v32 = vsel %vm443_vm6, %v442_v54, %v434_v40  ;;  %v517_v40 = vmul.f32 %v1472_v8, %v1411_v46  ;;  %v494_v49 = vmul.f32 %v1467_v7, %v1668_v48 }
 0x181   : > { %v1653_v59 = vsel %vm1539_vm7, %v447_v4, 0.0  ;;  %v1688_v13 = vsel %vm1543_vm8, %v451_v32, 0.0 }
 0x182   : > { %745 = vrot.lane.b32.xlu1 %v554_v60, %s1233_s14  ;;  %v549_v54 = vmul.f32 %v1484_v12, %v1653_v59  ;;  %v730_v60 = vadd.f32 %v722_v57, %v698_v6  ;;  %v525_v30 = vadd.f32 %v517_v40, %v493_v18  ;;  %v518_v57 = vmul.f32 %v1472_v8, %v1423_v52 }
 0x183   : > { %v394_v29 = vpop.permute.xlu1 %393  ;;  %v693_v8 = vmul.f32 %v1494_v19, %v1411_v46  ;;  %v692_v40 = vmul.f32 %v1490_v16, %v1435_v55 }
 0x184   : > { %v402_v37 = vsel %vm399_vm3, %v386_v39, %v394_v29  ;;  %v406_v62 = vsel %vm399_vm3, %v394_v29, %v386_v39 }
 0x185   : > { %v1647_v42 = vsel %vm1514_vm4, %v406_v62, 0.0  ;;  %v1663_v33 = vsel %vm1518_vm5, %v402_v37, 0.0  ;;  %v557_v62 = vadd.f32 %v549_v54, %v525_v30 }
 0x186   : > { %v491_v39 = vmul.f32 %v1464_v0, %v1647_v42  ;;  %789 = vrot.lane.b32.xlu1 %v729_v5, %s1234_s16  ;;  %v667_v7 = vmul.f32 %v1486_v14, %v1647_v42  ;;  %v691_v5 = vmul.f32 %v1490_v16, %v1421_v50 }
 0x187   : > { %v440_v38 = vpop.permute.xlu1 %439 }
 0x188   : > { %v446_v61 = vsel %vm443_vm6, %v432_v47, %v440_v38  ;;  %v450_v17 = vsel %vm443_vm6, %v440_v38, %v432_v47  ;;  %v492_v47 = vmul.f32 %v1464_v0, %v1663_v33  ;;  %v523_v29 = vadd.f32 %v515_v53, %v491_v39 }
 0x189   : > { %v1680_v9 = vsel %vm1539_vm7, %v446_v61, 0.0  ;;  %v1684_v36 = vsel %vm1543_vm8, %v450_v17, 0.0  ;;  %v550_v0 = vmul.f32 %v1484_v12, %v1688_v13  ;;  %v725_v39 = vmul.f32 %v1499_v21, %v1653_v59 }
 0x18a   : > { %v547_v4 = vmul.f32 %v1482_v11, %v1680_v9  ;;  %797 = vrot.lane.b32.xlu1 %v730_v60, %s1234_s16  ;;  %v548_v51 = vmul.f32 %v1482_v11, %v1684_v36  ;;  %v524_v41 = vadd.f32 %v516_v63, %v492_v47  ;;  %v526_v11 = vadd.f32 %v518_v57, %v494_v49 }
 0x18b   : > { %v723_v12 = vmul.f32 %v1501_v22, %v1680_v9  ;;  %v668_v38 = vmul.f32 %v1486_v14, %v1663_v33  ;;  %v699_v6 = vadd.f32 %v691_v5, %v667_v7  ;;  %v670_v61 = vmul.f32 %v1488_v15, %v1668_v48 }
 0x18c   : > { %v555_v37 = vadd.f32 %v547_v4, %v523_v29  ;;  %v556_v53 = vadd.f32 %v548_v51, %v524_v41  ;;  %v558_v32 = vadd.f32 %v550_v0, %v526_v11  ;;  %v701_v17 = vadd.f32 %v693_v8, %v669_v10 }
 0x18d   : > { %v724_v54 = vmul.f32 %v1501_v22, %v1684_v36  ;;  %v731_v60 = vadd.f32 %v723_v12, %v699_v6  ;;  %v694_v47 = vmul.f32 %v1494_v19, %v1423_v52  ;;  %v726_v14 = vmul.f32 %v1499_v21, %v1688_v13 }
 0x18e   : > { %739 = vrot.lane.b32.xlu0 %v555_v37, %s1233_s14  ;;  %741 = vrot.lane.b32.xlu1 %v557_v62, %s1233_s14  ;;  %v733_v4 = vadd.f32 %v725_v39, %v701_v17  ;;  %v700_v15 = vadd.f32 %v692_v40, %v668_v38  ;;  %v1235_v10 = vmov 11  }
 0x18f   : > { %v702_v49 = vadd.f32 %v694_v47, %v670_v61  ;;  %1152 = vset.pattern.permute.xlu0 %v1235_v10 }
 0x190   : > { %v565_v18 = vpop.permute.xlu0 %564  ;;  %v732_v16 = vadd.f32 %v724_v54, %v700_v15 }
 0x191   : > { %v734_v63 = vadd.f32 %v726_v14, %v702_v49 }
 0x192   : > { %747 = vrot.lane.b32.xlu0 %v556_v53, %s1233_s14  ;;  %749 = vrot.lane.b32.xlu1 %v558_v32, %s1233_s14 }
 0x194   : > { %v573_v29 = vpop.permute.xlu0 %572 }
 0x196   : > { %791 = vrot.lane.b32.xlu0 %v731_v60, %s1234_s16  ;;  %793 = vrot.lane.b32.xlu1 %v733_v4, %s1234_s16 }
 0x198   : > { %v561_v30 = vpop.permute.xlu1 %560 }
 0x199   : > { %v617_v22 = vpop.permute.xlu0 %616  ;;  %v575_v51 = vmul.f32 %v561_v30, %v1530_v43  ;;  %v576_v21 = vmul.f32 %v561_v30, %v1534_v45 }
 0x19a   : > { %799 = vrot.lane.b32.xlu0 %v732_v16, %s1234_s16  ;;  %801 = vrot.lane.b32.xlu1 %v734_v63, %s1234_s16  ;;  %v631_v62 = vmul.f32 %v617_v22, %v1558_v20  ;;  %v632_v57 = vmul.f32 %v617_v22, %v1562_v25  ;;  %v578_v20 = vmul.f32 %v565_v18, %v1593_v28 }
 0x19d   : > { %v585_v19 = vpop.permute.xlu1 %584  ;;  %v625_v6 = vpop.permute.xlu0 %624 }
 0x19e   : > { %v599_v37 = vmul.f32 %v585_v19, %v1391_v27  ;;  %v600_v0 = vmul.f32 %v585_v19, %v1397_v34  ;;  %883 = vperm.xlu0 %1152, %v1325_v3   ;;  %v577_v34 = vmul.f32 %v565_v18, %v1578_v58  ;;  %v635_v61 = vmul.f32 %v625_v6, %v1680_v9 }
 0x1a0   : > { %v607_v7 = vadd.f32 %v599_v37, %v575_v51  ;;  %v608_v41 = vadd.f32 %v600_v0, %v576_v21 }
 0x1a1   : > { %v589_v11 = vpop.permute.xlu1 %588 }
 0x1a2   : > { %v1744_v5 = vadd.f32 %v631_v62, %v607_v7  ;;  %v1746_v43 = vadd.f32 %v632_v57, %v608_v41  ;;  %v601_v45 = vmul.f32 %v589_v11, %v1399_v35  ;;  %v602_v27 = vmul.f32 %v589_v11, %v1409_v44  ;;  %v845_v30 = vpop.permute.xlu0 %844 }
 0x1a4   : > { %v609_v12 = vadd.f32 %v601_v45, %v577_v34  ;;  %v610_v53 = vadd.f32 %v602_v27, %v578_v20 }
 0x1a6   : > { %v621_v25 = vpop.permute.xlu1 %620 }
 0x1a7   : > { %v633_v8 = vmul.f32 %v621_v25, %v1601_v1  ;;  %v634_v39 = vmul.f32 %v621_v25, %v1605_v31  ;;  %v636_v1 = vmul.f32 %v625_v6, %v1684_v36 }
 0x1a9   : > { %v1754_v3 = vadd.f32 %v633_v8, %v609_v12  ;;  %v1756_v32 = vadd.f32 %v634_v39, %v610_v53 }
 0x1ab   : > { %v569_v38 = vpop.permute.xlu1 %568 }
 0x1ac   : > { %v579_v44 = vmul.f32 %v569_v38, %v1647_v42  ;;  %v580_v58 = vmul.f32 %v569_v38, %v1663_v33  ;;  %v581_v33 = vmul.f32 %v573_v29, %v1635_v56  ;;  %v226_v56 = vld [vmem:[%s1937_s0] ss:$2 sm:$0x3] }
 0x1ad   : > { %vm231_vm9 = vcmp.ge.s32.totalorder %v226_v56, 1  ;;  %vm232_vm10 = vcmp.le.s32.totalorder %v226_v56, 14 }
 0x1ae   : > { %v812_v63 = vsel %vm232_vm10, 1, %v1220_v2 }
 0x1af   : > { %v816_v21 = vrot.slane %v812_v63, %v1503_v23  ;;  %v820_v37 = vrot.slane %v812_v63, %v1505_v24 }
 0x1b0   : > { %v593_v35 = vpop.permute.xlu1 %592 }
 0x1b1   : > { %v603_v28 = vmul.f32 %v593_v35, %v1421_v50  ;;  %v604_v18 = vmul.f32 %v593_v35, %v1435_v55  ;;  %v582_v50 = vmul.f32 %v573_v29, %v1668_v48  ;;  %vm1805_vm15 = vcmp.eq.s32.totalorder %v816_v21, 1 }
 0x1b2   : > { %vm1809_vm0 = vcmp.eq.s32.totalorder %v820_v37, 1 }
 0x1b3   : > { %v611_v31 = vadd.f32 %v603_v28, %v579_v44  ;;  %v612_v17 = vadd.f32 %v604_v18, %v580_v58 }
 0x1b4   : > { %v597_v40 = vpop.permute.xlu1 %596 }
 0x1b5   : > { %v1764_v54 = vadd.f32 %v635_v61, %v611_v31  ;;  %v1766_v60 = vadd.f32 %v636_v1, %v612_v17  ;;  %v605_v47 = vmul.f32 %v597_v40, %v1411_v46  ;;  %v606_v42 = vmul.f32 %v597_v40, %v1423_v52  ;;  %v1778_v46 = vpop.permute.xlu0 %848 }
 0x1b7   : > { %v613_v14 = vadd.f32 %v605_v47, %v581_v33  ;;  %v614_v9 = vadd.f32 %v606_v42, %v582_v50 }
 0x1b9   : > { %v629_v55 = vpop.permute.xlu1 %628 }
 0x1ba   : > { %v637_v36 = vmul.f32 %v629_v55, %v1653_v59  ;;  %v638_v4 = vmul.f32 %v629_v55, %v1688_v13  ;;  %v760_v59 = vsel %vm231_vm9, 1, %v1220_v2 }
 0x1bb   : > { %v764_v22 = vrot.slane %v760_v59, %v1503_v23  ;;  %v768_v19 = vrot.slane %v760_v59, %v1505_v24 }
 0x1bc   : > { %v1774_v15 = vadd.f32 %v637_v36, %v613_v14  ;;  %v1776_v49 = vadd.f32 %v638_v4, %v614_v9 }
 0x1bd   : > { %vm1793_vm13 = vcmp.eq.s32.totalorder %v764_v22, 1  ;;  %vm1797_vm14 = vcmp.eq.s32.totalorder %v768_v19, 1 }
 0x1be   : > { %v841_v16 = vpop.permute.xlu1 %840 }
 0x1c2   : > { %v1780_v52 = vpop.permute.xlu1 %852 }
 0x1e8   : > { %v744_v48 = vpop.permute.xlu0 %743  ;;  %v736_v13 = vpop.permute.xlu1 %735 }
 0x1e9   : > { %v752_v57 = vsel %vm751_vm11, %v736_v13, %v744_v48  ;;  %v756_v7 = vsel %vm751_vm11, %v744_v48, %v736_v13 }
 0x1ea   : > { %v771_v45 = vsel %vm1793_vm13, %v756_v7, 0.0  ;;  %v772_v27 = vsel %vm1797_vm14, %v752_v57, 0.0 }
 0x1eb   : > { %v779_v8 = vadd.f32 %v771_v45, %v1744_v5  ;;  %v780_v39 = vadd.f32 %v772_v27, %v1746_v43 }
 0x1ec   : > { %v788_v29 = vpop.permute.xlu0 %787 }
 0x1f0   : > { %v738_v51 = vpop.permute.xlu1 %737  ;;  %v796_v0 = vpop.permute.xlu0 %795 }
 0x1f1   : > { %v804_v10 = vsel %vm803_vm12, %v788_v29, %v796_v0  ;;  %v808_v11 = vsel %vm803_vm12, %v796_v0, %v788_v29 }
 0x1f2   : > { %v823_v25 = vsel %vm1805_vm15, %v804_v10, 0.0  ;;  %v824_v12 = vsel %vm1809_vm0, %v808_v11, 0.0 }
 0x1f3   : > { %v831_v35 = vadd.f32 %v823_v25, %v779_v8  ;;  %v832_v44 = vadd.f32 %v824_v12, %v780_v39 }
 0x1f4   : > { %v746_v23 = vpop.permute.xlu1 %745 }
 0x1f5   : > { %v753_v34 = vsel %vm751_vm11, %v738_v51, %v746_v23  ;;  %v757_v20 = vsel %vm751_vm11, %v746_v23, %v738_v51  ;;  %v856_v47 = vadd.f32 %v841_v16, %v832_v44  ;;  %v855_v42 = vadd.f32 %v841_v16, %v831_v35 }
 0x1f6   : > { %v773_v38 = vsel %vm1793_vm13, %v757_v20, 0.0  ;;  %v774_v6 = vsel %vm1797_vm14, %v753_v34, 0.0 }
 0x1f7   : > { %v781_v28 = vadd.f32 %v773_v38, %v1754_v3  ;;  %v782_v18 = vadd.f32 %v774_v6, %v1756_v32  ;;  %v864_v55 = vmax.f32 %v856_v47, 0.0  ;;  %v863_v9 = vmax.f32 %v855_v42, 0.0  ;;  %v1153_v42 = vld [vmem:[%s1338_s15] sm:$0xff] }
 0x1f8   : > { %v790_v53 = vpop.permute.xlu1 %789 }
 0x1f9   : > { %v871_v63 = vmin.f32 %v863_v9, 6.0 }
 0x1fc   : > { %v798_v58 = vpop.permute.xlu1 %797 }
 0x1fd   : > { %v805_v61 = vsel %vm803_vm12, %v790_v53, %v798_v58  ;;  %v809_v5 = vsel %vm803_vm12, %v798_v58, %v790_v53 }
 0x1fe   : > { %v825_v43 = vsel %vm1805_vm15, %v805_v61, 0.0  ;;  %v826_v1 = vsel %vm1809_vm0, %v809_v5, 0.0 }
 0x1ff   : > { %v833_v31 = vadd.f32 %v825_v43, %v781_v28  ;;  %v834_v17 = vadd.f32 %v826_v1, %v782_v18 }
 0x200   : > { %v740_v40 = vpop.permute.xlu0 %739  ;;  %v742_v3 = vpop.permute.xlu1 %741 }
 0x201   : > { %v858_v33 = vadd.f32 %v845_v30, %v834_v17  ;;  %v857_v32 = vadd.f32 %v845_v30, %v833_v31  ;;  %v872_v30 = vmin.f32 %v864_v55, 6.0 }
 0x203   : > { %v866_v14 = vmax.f32 %v858_v33, 0.0  ;;  %v865_v36 = vmax.f32 %v857_v32, 0.0  ;;  %v1154_v33 = vld [vmem:[%s1338_s15 + $0x8] sm:$0xff]  ;;  %s1236_s15 = smov [#allocation2]  }
 0x204   : > { %v748_v50 = vpop.permute.xlu0 %747  ;;  %v750_v4 = vpop.permute.xlu1 %749  ;;  %s1159_s14 = sshll.u32 %s1236_s15, 4  ;;  %s1160_s14 = int_to_ptr.vmem [resolvable:$false] %s1159_s14 }
 0x205   : > { %v754_v56 = vsel %vm751_vm11, %v740_v40, %v748_v50  ;;  %v758_v48 = vsel %vm751_vm11, %v748_v50, %v740_v40  ;;  %v755_v59 = vsel %vm751_vm11, %v742_v3, %v750_v4  ;;  %v759_v16 = vsel %vm751_vm11, %v750_v4, %v742_v3  ;;  %s1161_s16 = scalar_lea.vmem %s1160_s14, 512  ;;  %p1162_p0 = scmp.lt.s32.totalorder %s1897_s9, %s1160_s14 }
 0x206   : > { %v874_v29 = vmin.f32 %v866_v14, 6.0  ;;  %v873_v22 = vmin.f32 %v865_v36, 6.0  ;;  %v775_v19 = vsel %vm1793_vm13, %v758_v48, 0.0  ;;  %v776_v51 = vsel %vm1797_vm14, %v754_v56, 0.0  ;;  %p1163_p1 = scmp.lt.s32.totalorder %s1161_s16, %s1155_s13 }
 0x207   : > { %v777_v37 = vsel %vm1793_vm13, %v759_v16, 0.0  ;;  %v778_v0 = vsel %vm1797_vm14, %v755_v59, 0.0  ;;  %v783_v23 = vadd.f32 %v775_v19, %v1764_v54  ;;  %v784_v10 = vadd.f32 %v776_v51, %v1766_v60 }
 0x208   : > { %v792_v13 = vpop.permute.xlu0 %791  ;;  %v794_v21 = vpop.permute.xlu1 %793  ;;  %v1058_v57 = vpack.c.bf16 %v874_v29, %v872_v30  ;;  %v1060_v7 = vpack.c.bf16 %v873_v22, %v871_v63  ;;  %v785_v45 = vadd.f32 %v777_v37, %v1774_v15  ;;  %v786_v27 = vadd.f32 %v778_v0, %v1776_v49  ;;  %p1164_p2 = por %p1163_p1, %p1162_p0 }
 0x20a   : > { %1059 = vmatprep.subr.bf16.mxu1 %v1058_v57  ;;  %p1165_p3 = pnand %p1164_p2, %p1158_p13 }
 0x20b   : > { %1061 = vmatpush1.bf16.msra.mxu1 %v1060_v7 }
 0x20c   : > { %v800_v11 = vpop.permute.xlu0 %799  ;;  %v802_v34 = vpop.permute.xlu1 %801 }
 0x20d   : > { %v806_v62 = vsel %vm803_vm12, %v792_v13, %v800_v11  ;;  %v810_v2 = vsel %vm803_vm12, %v800_v11, %v792_v13  ;;  %v807_v60 = vsel %vm803_vm12, %v794_v21, %v802_v34  ;;  %v811_v15 = vsel %vm803_vm12, %v802_v34, %v794_v21 }
 0x20e   : > { %v827_v20 = vsel %vm1805_vm15, %v806_v62, 0.0  ;;  %v828_v54 = vsel %vm1809_vm0, %v810_v2, 0.0  ;;  %v829_v12 = vsel %vm1805_vm15, %v807_v60, 0.0  ;;  %v830_v53 = vsel %vm1809_vm0, %v811_v15, 0.0 }
 0x20f   : > { %v835_v49 = vadd.f32 %v827_v20, %v783_v23  ;;  %v836_v25 = vadd.f32 %v828_v54, %v784_v10  ;;  %v837_v8 = vadd.f32 %v829_v12, %v785_v45  ;;  %v838_v39 = vadd.f32 %v830_v53, %v786_v27 }
 0x211   : > { %v859_v38 = vadd.f32 %v1778_v46, %v835_v49  ;;  %v860_v6 = vadd.f32 %v1778_v46, %v836_v25  ;;  %v861_v35 = vadd.f32 %v1780_v52, %v837_v8  ;;  %v862_v44 = vadd.f32 %v1780_v52, %v838_v39  ;;  %v879_v46 = vld [vmem:[%s1940_s3] sm:$0xff] }
 0x213   : > { %v867_v26 = vmax.f32 %v859_v38, 0.0  ;;  %v868_v58 = vmax.f32 %v860_v6, 0.0  ;;  %v869_v28 = vmax.f32 %v861_v35, 0.0  ;;  %v870_v18 = vmax.f32 %v862_v44, 0.0 }
 0x215   : > { %v876_v24 = vmin.f32 %v868_v58, 6.0  ;;  %v875_v61 = vmin.f32 %v867_v26, 6.0  ;;  %v878_v41 = vmin.f32 %v870_v18, 6.0  ;;  %v877_v5 = vmin.f32 %v869_v28, 6.0 }
 0x217   : > { %v1062_v43 = vpack.c.bf16 %v878_v41, %v876_v24  ;;  %v1064_v1 = vpack.c.bf16 %v877_v5, %v875_v61 }
 0x219   : > { %1063 = vmatprep.subr.bf16.mxu1 %v1062_v43 }
 0x21a   : > { %1065 = vmatpush1.bf16.msra.mxu1 %v1064_v1 }
 0x21d   : > { %1051 = vmatmul.mubr.msk.f32.vlgmr.msra.gmra.mrb[0].mxu1 %vm886_vm1, %v879_v46  ;;  %v884_v52 = vpop.permute.xlu0 %883 }
 0x2f0   : > { %v956_v31 = vpop.f32.mrb[0].mxu1 }
 0x2f1   : > { %v957_v17 = vadd.f32 %v956_v31, %v884_v52  ;;  %v958_v40 = vpop.f32.mrb[1].mxu1 }
 0x2f2   : > { %v959_v47 = vadd.f32 %v958_v40, %v884_v52 }
 0x2f3   : > { %v961_v3 = vadd.f32 %v1153_v42, %v957_v17 }
 0x2f4   : > { %v962_v32 = vadd.f32 %v1154_v33, %v959_v47 }
 0x2f5   : > { %963 = vst [vmem:[%s218_s8] sm:$0xff] %v961_v3 }
 0x2f6   : > { %964 = vst [vmem:[%s218_s8 + $0x8] sm:$0xff] %v962_v32 }
 0x2f7   : > { %1168 = shalt.err (!%p1165_p3)
}
 0x2f8   : > { %s1169_s17 = scalar_lea.hbm %s1895_s12, 256  ;;  %s1173_s26 = scalar_lea.hbm %s1942_s5, 512 }
 0x2f9   : > { %p1170_p4 = scmp.ne.s32.totalorder %s1895_s12, %s1169_s17  ;;  %p1174_p9 = scmp.lt.u32.totalorder %s1895_s12, %s1942_s5 }
 0x2fa   : > { %p1175_p10 = scmp.lt.u32.totalorder %s1173_s26, %s1169_s17  ;;  %p1177_p12 = scmp.lt.u32.totalorder %s1169_s17, %s1895_s12 }
 0x2fb   : > { %p1171_p7 = pnand %p1170_p4, %p1305_p5 }
 0x2fc   : > { %p1176_p11 = por %p1175_p10, %p1174_p9 }
 0x2fd   : > { %p1172_p8 = pneg %p1171_p7 }
 0x2fe   : > { %p1178_p13 = por %p1177_p12, %p1176_p11 }
 0x300   : > { %p1179_p0 = pnand %p1178_p13, %p1172_p8 }
 0x302   : > { %1182 = shalt.err (!%p1179_p0)
}
 0x303   : > { %1066 = dma.vmem_to_hbm [thread:$0]  (%p1305_p5), %s1897_s9, 256, %s1895_s12, %s966_s22  }
 0x304 PF: > { %p1072_p1 = scmp.ge.s32.totalorder %s1217_s21, 2  ;;  %s992_s7 = sand.u32 1, %s1205_s18  }
 0x305   : > { %s993_s8 = scalar_lea.sflag [#allocation3], %s992_s7 }
 0x306   : > { %p1069_p2 = pnand %p1072_p1, %p1309_p6 }
 0x308   : > { %1200 = dma.done.wait (!%p1069_p2), %s993_s8, 256  }
 0x309   : > { %1202 = vsyncadd (!%p1069_p2), %s993_s8, 4294967040  ;;  %p15_p3 = scmp.ge.s32.totalorder %s1292_s24, 4   ;;  %s1961_s18 = smov %s1209_s19 }
 0x30a   : > { %s1962_s19 = smov %s1213_s20  ;;  %s1963_s20 = smov %s1303_s27 }
 0x30b   : > { %s1964_s21 = smov %s1292_s24  ;;  %17 = sbr.rel (!%p15_p3) target bundleno = 3 (0x3), region = 76 }
 0x312   :  { %998 = vsyncpa [#allocation3], 1 }
 0x313   :  { %1000 = vsyncpa [#allocation3 + $0x1], 1 }

</bundles_post_ra>
